<compile_context>
chip_gen: v5e
topology: v5e:2x2
jax: 0.10.0
libtpu: 0.0.40
codegen_flags: <defaults>
</compile_context>

<pallas_src>
import jax
import jax.numpy as jnp
from jax.experimental import pallas as pl
from jax.experimental.pallas import tpu as pltpu


# --------------------- Kernel A: fused projections (MXU) ---------------------
# p0 = z0 @ W            (rows = B*S0)
# p1 = z1 @ W + bias     (rows = B*S1)
# B is folded into the matmul M dimension; both dots share the resident weight
# tile.  These operands are tiny compared to the expanded output, so a single
# whole-array VMEM pass is used (tile over rows if B*(S0+S1)*D ever grows).
def proj_kernel(z0f_ref, z1f_ref, w_ref, b_ref, p0_ref, p1_ref):
    w = w_ref[...]
    p0_ref[...] = jnp.dot(z0f_ref[...], w, preferred_element_type=jnp.float32)
    p1_ref[...] = (
        jnp.dot(z1f_ref[...], w, preferred_element_type=jnp.float32) + b_ref[...]
    )


# --------------- Kernel B: expand + BatchNorm affine + ReLU ------------------
# out[b, i, j*O + o] = relu(scale[o] * (p0[b,i,o] + p1[b,j,o]) + shift[o])
# The output block is lane-dense: (1, TS0, S1*O).  The per-feature affine is
# applied once to the small (TS0,O)/(S1,O) tiles; the only big-tensor work is
# the broadcast add + ReLU + dense store.  The S1 loop is a short static
# unroll writing 128-aligned (here 64-aligned) lane chunks of the folded block.
def expand_bn_relu_kernel(p0_ref, p1_ref, scale_ref, shift_ref, o_ref):
    s1 = p1_ref.shape[1]
    o_dim = scale_ref.shape[-1]
    a = p0_ref[0] * scale_ref[...]                         # (TS0, O)
    c = p1_ref[0] * scale_ref[...] + shift_ref[...]        # (S1,  O)
    for j in range(s1):                                    # static unroll
        o_ref[0, :, j * o_dim:(j + 1) * o_dim] = jnp.maximum(
            a + c[j:j + 1, :], 0.0)


def _pick_s0_tile(s0, s1, o, itemsize=4, block_budget_bytes=4 << 20):
    """Largest S0 tile whose folded output block fits the budget while
    respecting the TPU (8,128) block-shape rule (tile == s0 or tile % 8 == 0).
    Keeps a double-buffered output block far below v7x's 64 MiB VMEM."""
    if s0 * s1 * o * itemsize <= block_budget_bytes:
        return s0
    for t in range(s0 - 1, 0, -1):
        if s0 % t == 0 and t % 8 == 0 and t * s1 * o * itemsize <= block_budget_bytes:
            return t
    return s0  # fallback: single full-S0 block


def fully_connected_forward(z0, z1, w, bias, gamma, beta, eps=1e-5):
    B, S0, D = z0.shape
    _, S1, _ = z1.shape
    O = w.shape[1]
    f32 = jnp.float32

    # ---- Kernel A: one MXU pass over B*(S0+S1) projection rows --------------
    p0f, p1f = pl.pallas_call(
        proj_kernel,
        out_shape=(
            jax.ShapeDtypeStruct((B * S0, O), f32),
            jax.ShapeDtypeStruct((B * S1, O), f32),
        ),
        in_specs=[pl.BlockSpec(memory_space=pltpu.MemorySpace.VMEM)] * 4,
        out_specs=(
            pl.BlockSpec(memory_space=pltpu.MemorySpace.VMEM),
            pl.BlockSpec(memory_space=pltpu.MemorySpace.VMEM),
        ),
    )(z0.reshape(B * S0, D), z1.reshape(B * S1, D), w, bias.reshape(1, O))
    p0 = p0f.reshape(B, S0, O)
    p1 = p1f.reshape(B, S1, O)

    # ---- Closed-form BatchNorm1d statistics from the small projections ------
    # (tiny (B,O)-sized glue in plain JAX; the big tensor is never reduced)
    n = B * S0 * S1
    A = jnp.sum(p0, axis=1)          # (B, O)   sum_i a_i
    C = jnp.sum(p1, axis=1)          # (B, O)   sum_j c_j
    A2 = jnp.sum(p0 * p0, axis=1)    # (B, O)   sum_i a_i^2
    C2 = jnp.sum(p1 * p1, axis=1)    # (B, O)   sum_j c_j^2
    fsum = jnp.sum(S1 * A + S0 * C, axis=0)                   # (O,)
    fsq = jnp.sum(S1 * A2 + S0 * C2 + 2.0 * A * C, axis=0)    # (O,)
    mean = fsum / n
    var = jnp.maximum(fsq / n - mean * mean, 0.0)  # biased var, clamped >= 0
    inv_std = jax.lax.rsqrt(var + eps)
    scale = (gamma * inv_std).reshape(1, O)
    shift = (beta - mean * gamma * inv_std).reshape(1, O)

    # ---- Kernel B: single lane-dense write of the (B,S0,S1,O) activation ----
    ts0 = _pick_s0_tile(S0, S1, O)
    out_folded = pl.pallas_call(
        expand_bn_relu_kernel,
        out_shape=jax.ShapeDtypeStruct((B, S0, S1 * O), f32),
        grid=(B, S0 // ts0),
        in_specs=[
            pl.BlockSpec((1, ts0, O), lambda b, s: (b, s, 0)),      # p0 tile
            pl.BlockSpec((1, S1, O), lambda b, s: (b, 0, 0)),       # p1 (per-b)
            pl.BlockSpec((1, O), lambda b, s: (0, 0)),              # scale
            pl.BlockSpec((1, O), lambda b, s: (0, 0)),              # shift
        ],
        out_specs=pl.BlockSpec((1, ts0, S1 * O), lambda b, s: (b, s, 0)),
        compiler_params=pltpu.CompilerParams(
            dimension_semantics=("parallel", "parallel"),
            vmem_limit_bytes=48 * 1024 * 1024,
        ),
    )(p0, p1, scale, shift)

    return out_folded.reshape(B, S0, S1, O)


# ----------------------- Reference (plain JAX) for validation ----------------
def reference_forward(z0, z1, w, bias, gamma, beta, eps=1e-5):
    combined = z0[:, :, None, :] + z1[:, None, :, :]
    B, S0, S1, D = combined.shape
    flat = combined.reshape(-1, D)
    y = flat @ w + bias
    mean = y.mean(axis=0)
    var = ((y - mean) ** 2).mean(axis=0)
    y = (y - mean) / jnp.sqrt(var + eps) * gamma + beta
    return jnp.maximum(y, 0.0).reshape(B, S0, S1, -1)


if __name__ == "__main__":
    # Small shapes consistent with the module (hidden_dim d=64 in ContactCNN).
    B, S0, S1, D, O = 2, 8, 8, 32, 64

    k0, k1, kw, kb = jax.random.split(jax.random.PRNGKey(0), 4)

    # Inputs drawn on a bf16-exact lattice: the linear stage is then bit-exact
    # regardless of how the MXU decomposes f32 matmuls at default precision,
    # so the kernel-vs-reference check stays tight even though the kernel uses
    # the (mathematically identical) distributed form z0@W + z1@W.
    z0 = jax.random.randint(k0, (B, S0, D), -8, 8).astype(jnp.float32) / 8.0
    z1 = jax.random.randint(k1, (B, S1, D), -8, 8).astype(jnp.float32) / 8.0
    w = jax.random.randint(kw, (D, O), -16, 16).astype(jnp.float32) / 64.0
    bias = jax.random.randint(kb, (O,), -16, 16).astype(jnp.float32) / 64.0

    # BatchNorm1d affine params at PyTorch defaults (training-mode statistics).
    gamma = jnp.ones((O,), jnp.float32)
    beta = jnp.zeros((O,), jnp.float32)

    out = jax.jit(fully_connected_forward)(z0, z1, w, bias, gamma, beta)
    out = jax.block_until_ready(out)

    ref = reference_forward(z0, z1, w, bias, gamma, beta)
    assert out.shape == (B, S0, S1, O)
    assert jnp.allclose(out, ref, atol=1e-4, rtol=1e-4), "mismatch vs reference"

    print("KERNEL_OK")
</pallas_src>

<mosaic_0001>
module attributes {stable_mosaic.version = 11 : i64} {
  func.func @proj_kernel(%arg0: memref<16x32xf32, #tpu.memory_space<vmem>>, %arg1: memref<16x32xf32, #tpu.memory_space<vmem>>, %arg2: memref<32x64xf32, #tpu.memory_space<vmem>>, %arg3: memref<1x64xf32, #tpu.memory_space<vmem>>, %arg4: memref<16x64xf32, #tpu.memory_space<vmem>>, %arg5: memref<16x64xf32, #tpu.memory_space<vmem>>) attributes {dimension_semantics = [], scalar_prefetch = 0 : i64, scratch_operands = 0 : i64, tpu.core_type = #tpu.core_type<tc>} {
    %c0 = arith.constant 0 : index
    %c0_0 = arith.constant 0 : index
    %0 = vector.load %arg2[%c0, %c0_0] : memref<32x64xf32, #tpu.memory_space<vmem>>, vector<32x64xf32>
    %c0_1 = arith.constant 0 : index
    %c0_2 = arith.constant 0 : index
    %1 = vector.load %arg0[%c0_1, %c0_2] : memref<16x32xf32, #tpu.memory_space<vmem>>, vector<16x32xf32>
    %cst = arith.constant dense<0.000000e+00> : vector<16x64xf32>
    %2 = tpu.matmul %1, %0, %cst {dimension_numbers = #tpu.dot_dimension_numbers<[1], [0], [0], [1], [0, 0, 1, 1], [], []>} : vector<16x32xf32>, vector<32x64xf32>, vector<16x64xf32> -> vector<16x64xf32>
    %c0_3 = arith.constant 0 : index
    %c0_4 = arith.constant 0 : index
    %3 = vector.load %arg4[%c0_3, %c0_4] : memref<16x64xf32, #tpu.memory_space<vmem>>, vector<16x64xf32>
    tpu.vector_store %arg4[%c0_3, %c0_4], %2 {strides = array<i32>} : memref<16x64xf32, #tpu.memory_space<vmem>>, vector<16x64xf32>,
    %c0_5 = arith.constant 0 : index
    %c0_6 = arith.constant 0 : index
    %4 = vector.load %arg1[%c0_5, %c0_6] : memref<16x32xf32, #tpu.memory_space<vmem>>, vector<16x32xf32>
    %cst_7 = arith.constant dense<0.000000e+00> : vector<16x64xf32>
    %5 = tpu.matmul %4, %0, %cst_7 {dimension_numbers = #tpu.dot_dimension_numbers<[1], [0], [0], [1], [0, 0, 1, 1], [], []>} : vector<16x32xf32>, vector<32x64xf32>, vector<16x64xf32> -> vector<16x64xf32>
    %c0_8 = arith.constant 0 : index
    %c0_9 = arith.constant 0 : index
    %6 = vector.load %arg3[%c0_8, %c0_9] : memref<1x64xf32, #tpu.memory_space<vmem>>, vector<1x64xf32>
    %7 = vector.broadcast %6 : vector<1x64xf32> to vector<16x64xf32>
    %8 = arith.addf %5, %7 : vector<16x64xf32>
    %c0_10 = arith.constant 0 : index
    %c0_11 = arith.constant 0 : index
    %9 = vector.load %arg5[%c0_10, %c0_11] : memref<16x64xf32, #tpu.memory_space<vmem>>, vector<16x64xf32>
    tpu.vector_store %arg5[%c0_10, %c0_11], %8 {strides = array<i32>} : memref<16x64xf32, #tpu.memory_space<vmem>>, vector<16x64xf32>,
    return
  }
}

module attributes {stable_mosaic.version = 11 : i64} {
  func.func @expand_bn_relu_kernel(%arg0: i32, %arg1: i32, %arg2: memref<1x8x64xf32, #tpu.memory_space<vmem>>, %arg3: memref<1x8x64xf32, #tpu.memory_space<vmem>>, %arg4: memref<1x64xf32, #tpu.memory_space<vmem>>, %arg5: memref<1x64xf32, #tpu.memory_space<vmem>>, %arg6: memref<1x8x512xf32, #tpu.memory_space<vmem>>) attributes {dimension_semantics = [#tpu.dimension_semantics<parallel>, #tpu.dimension_semantics<parallel>], iteration_bounds = array<i64: 2, 1>, scalar_prefetch = 0 : i64, scratch_operands = 0 : i64, tpu.core_type = #tpu.core_type<tc>, window_params = [{transform_indices = @transform_0, window_bounds = array<i64: 1, 8, 64>}, {transform_indices = @transform_1, window_bounds = array<i64: 1, 8, 64>}, {pipeline_mode = #tpu.pipeline_mode<synchronous>, transform_indices = @transform_2, window_bounds = array<i64: 1, 64>}, {pipeline_mode = #tpu.pipeline_mode<synchronous>, transform_indices = @transform_3, window_bounds = array<i64: 1, 64>}, {transform_indices = @transform_4, window_bounds = array<i64: 1, 8, 512>}]} {
    %c0 = arith.constant 0 : index
    %c0_0 = arith.constant 0 : index
    %c0_1 = arith.constant 0 : index
    %0 = vector.load %arg2[%c0, %c0_0, %c0_1] : memref<1x8x64xf32, #tpu.memory_space<vmem>>, vector<1x8x64xf32>
    %1 = vector.shape_cast %0 : vector<1x8x64xf32> to vector<8x64xf32>
    %c0_2 = arith.constant 0 : index
    %c0_3 = arith.constant 0 : index
    %2 = vector.load %arg4[%c0_2, %c0_3] : memref<1x64xf32, #tpu.memory_space<vmem>>, vector<1x64xf32>
    %3 = vector.broadcast %2 : vector<1x64xf32> to vector<8x64xf32>
    %4 = arith.mulf %1, %3 : vector<8x64xf32>
    %c0_4 = arith.constant 0 : index
    %c0_5 = arith.constant 0 : index
    %c0_6 = arith.constant 0 : index
    %5 = vector.load %arg3[%c0_4, %c0_5, %c0_6] : memref<1x8x64xf32, #tpu.memory_space<vmem>>, vector<1x8x64xf32>
    %6 = vector.shape_cast %5 : vector<1x8x64xf32> to vector<8x64xf32>
    %c0_7 = arith.constant 0 : index
    %c0_8 = arith.constant 0 : index
    %7 = vector.load %arg4[%c0_7, %c0_8] : memref<1x64xf32, #tpu.memory_space<vmem>>, vector<1x64xf32>
    %8 = vector.broadcast %7 : vector<1x64xf32> to vector<8x64xf32>
    %9 = arith.mulf %6, %8 : vector<8x64xf32>
    %c0_9 = arith.constant 0 : index
    %c0_10 = arith.constant 0 : index
    %10 = vector.load %arg5[%c0_9, %c0_10] : memref<1x64xf32, #tpu.memory_space<vmem>>, vector<1x64xf32>
    %11 = vector.broadcast %10 : vector<1x64xf32> to vector<8x64xf32>
    %12 = arith.addf %9, %11 : vector<8x64xf32>
    %13 = vector.extract_strided_slice %12 {offsets = [0, 0], sizes = [1, 64], strides = [1, 1]} : vector<8x64xf32> to vector<1x64xf32>
    %14 = vector.broadcast %13 : vector<1x64xf32> to vector<8x64xf32>
    %15 = arith.addf %4, %14 : vector<8x64xf32>
    %cst = arith.constant 0.000000e+00 : f32
    %16 = vector.broadcast %cst : f32 to vector<8x64xf32>
    %17 = arith.maximumf %15, %16 : vector<8x64xf32>
    %c0_11 = arith.constant 0 : index
    %c0_12 = arith.constant 0 : index
    %c0_13 = arith.constant 0 : index
    %18 = vector.load %arg6[%c0_11, %c0_12, %c0_13] : memref<1x8x512xf32, #tpu.memory_space<vmem>>, vector<1x8x64xf32>
    %19 = vector.shape_cast %18 : vector<1x8x64xf32> to vector<8x64xf32>
    %20 = vector.shape_cast %17 : vector<8x64xf32> to vector<1x8x64xf32>
    tpu.vector_store %arg6[%c0_11, %c0_12, %c0_13], %20 {strides = array<i32>} : memref<1x8x512xf32, #tpu.memory_space<vmem>>, vector<1x8x64xf32>,
    %21 = vector.extract_strided_slice %12 {offsets = [1, 0], sizes = [1, 64], strides = [1, 1]} : vector<8x64xf32> to vector<1x64xf32>
    %22 = vector.broadcast %21 : vector<1x64xf32> to vector<8x64xf32>
    %23 = arith.addf %4, %22 : vector<8x64xf32>
    %cst_14 = arith.constant 0.000000e+00 : f32
    %24 = vector.broadcast %cst_14 : f32 to vector<8x64xf32>
    %25 = arith.maximumf %23, %24 : vector<8x64xf32>
    %c0_15 = arith.constant 0 : index
    %c0_16 = arith.constant 0 : index
    %c64 = arith.constant 64 : index
    %26 = vector.load %arg6[%c0_15, %c0_16, %c64] : memref<1x8x512xf32, #tpu.memory_space<vmem>>, vector<1x8x64xf32>
    %27 = vector.shape_cast %26 : vector<1x8x64xf32> to vector<8x64xf32>
    %28 = vector.shape_cast %25 : vector<8x64xf32> to vector<1x8x64xf32>
    tpu.vector_store %arg6[%c0_15, %c0_16, %c64], %28 {strides = array<i32>} : memref<1x8x512xf32, #tpu.memory_space<vmem>>, vector<1x8x64xf32>,
    %29 = vector.extract_strided_slice %12 {offsets = [2, 0], sizes = [1, 64], strides = [1, 1]} : vector<8x64xf32> to vector<1x64xf32>
    %30 = vector.broadcast %29 : vector<1x64xf32> to vector<8x64xf32>
    %31 = arith.addf %4, %30 : vector<8x64xf32>
    %cst_17 = arith.constant 0.000000e+00 : f32
    %32 = vector.broadcast %cst_17 : f32 to vector<8x64xf32>
    %33 = arith.maximumf %31, %32 : vector<8x64xf32>
    %c0_18 = arith.constant 0 : index
    %c0_19 = arith.constant 0 : index
    %c128 = arith.constant 128 : index
    %34 = vector.load %arg6[%c0_18, %c0_19, %c128] : memref<1x8x512xf32, #tpu.memory_space<vmem>>, vector<1x8x64xf32>
    %35 = vector.shape_cast %34 : vector<1x8x64xf32> to vector<8x64xf32>
    %36 = vector.shape_cast %33 : vector<8x64xf32> to vector<1x8x64xf32>
    tpu.vector_store %arg6[%c0_18, %c0_19, %c128], %36 {strides = array<i32>} : memref<1x8x512xf32, #tpu.memory_space<vmem>>, vector<1x8x64xf32>,
    %37 = vector.extract_strided_slice %12 {offsets = [3, 0], sizes = [1, 64], strides = [1, 1]} : vector<8x64xf32> to vector<1x64xf32>
    %38 = vector.broadcast %37 : vector<1x64xf32> to vector<8x64xf32>
    %39 = arith.addf %4, %38 : vector<8x64xf32>
    %cst_20 = arith.constant 0.000000e+00 : f32
    %40 = vector.broadcast %cst_20 : f32 to vector<8x64xf32>
    %41 = arith.maximumf %39, %40 : vector<8x64xf32>
    %c0_21 = arith.constant 0 : index
    %c0_22 = arith.constant 0 : index
    %c192 = arith.constant 192 : index
    %42 = vector.load %arg6[%c0_21, %c0_22, %c192] : memref<1x8x512xf32, #tpu.memory_space<vmem>>, vector<1x8x64xf32>
    %43 = vector.shape_cast %42 : vector<1x8x64xf32> to vector<8x64xf32>
    %44 = vector.shape_cast %41 : vector<8x64xf32> to vector<1x8x64xf32>
    tpu.vector_store %arg6[%c0_21, %c0_22, %c192], %44 {strides = array<i32>} : memref<1x8x512xf32, #tpu.memory_space<vmem>>, vector<1x8x64xf32>,
    %45 = vector.extract_strided_slice %12 {offsets = [4, 0], sizes = [1, 64], strides = [1, 1]} : vector<8x64xf32> to vector<1x64xf32>
    %46 = vector.broadcast %45 : vector<1x64xf32> to vector<8x64xf32>
    %47 = arith.addf %4, %46 : vector<8x64xf32>
    %cst_23 = arith.constant 0.000000e+00 : f32
    %48 = vector.broadcast %cst_23 : f32 to vector<8x64xf32>
    %49 = arith.maximumf %47, %48 : vector<8x64xf32>
    %c0_24 = arith.constant 0 : index
    %c0_25 = arith.constant 0 : index
    %c256 = arith.constant 256 : index
    %50 = vector.load %arg6[%c0_24, %c0_25, %c256] : memref<1x8x512xf32, #tpu.memory_space<vmem>>, vector<1x8x64xf32>
    %51 = vector.shape_cast %50 : vector<1x8x64xf32> to vector<8x64xf32>
    %52 = vector.shape_cast %49 : vector<8x64xf32> to vector<1x8x64xf32>
    tpu.vector_store %arg6[%c0_24, %c0_25, %c256], %52 {strides = array<i32>} : memref<1x8x512xf32, #tpu.memory_space<vmem>>, vector<1x8x64xf32>,
    %53 = vector.extract_strided_slice %12 {offsets = [5, 0], sizes = [1, 64], strides = [1, 1]} : vector<8x64xf32> to vector<1x64xf32>
    %54 = vector.broadcast %53 : vector<1x64xf32> to vector<8x64xf32>
    %55 = arith.addf %4, %54 : vector<8x64xf32>
    %cst_26 = arith.constant 0.000000e+00 : f32
    %56 = vector.broadcast %cst_26 : f32 to vector<8x64xf32>
    %57 = arith.maximumf %55, %56 : vector<8x64xf32>
    %c0_27 = arith.constant 0 : index
    %c0_28 = arith.constant 0 : index
    %c320 = arith.constant 320 : index
    %58 = vector.load %arg6[%c0_27, %c0_28, %c320] : memref<1x8x512xf32, #tpu.memory_space<vmem>>, vector<1x8x64xf32>
    %59 = vector.shape_cast %58 : vector<1x8x64xf32> to vector<8x64xf32>
    %60 = vector.shape_cast %57 : vector<8x64xf32> to vector<1x8x64xf32>
    tpu.vector_store %arg6[%c0_27, %c0_28, %c320], %60 {strides = array<i32>} : memref<1x8x512xf32, #tpu.memory_space<vmem>>, vector<1x8x64xf32>,
    %61 = vector.extract_strided_slice %12 {offsets = [6, 0], sizes = [1, 64], strides = [1, 1]} : vector<8x64xf32> to vector<1x64xf32>
    %62 = vector.broadcast %61 : vector<1x64xf32> to vector<8x64xf32>
    %63 = arith.addf %4, %62 : vector<8x64xf32>
    %cst_29 = arith.constant 0.000000e+00 : f32
    %64 = vector.broadcast %cst_29 : f32 to vector<8x64xf32>
    %65 = arith.maximumf %63, %64 : vector<8x64xf32>
    %c0_30 = arith.constant 0 : index
    %c0_31 = arith.constant 0 : index
    %c384 = arith.constant 384 : index
    %66 = vector.load %arg6[%c0_30, %c0_31, %c384] : memref<1x8x512xf32, #tpu.memory_space<vmem>>, vector<1x8x64xf32>
    %67 = vector.shape_cast %66 : vector<1x8x64xf32> to vector<8x64xf32>
    %68 = vector.shape_cast %65 : vector<8x64xf32> to vector<1x8x64xf32>
    tpu.vector_store %arg6[%c0_30, %c0_31, %c384], %68 {strides = array<i32>} : memref<1x8x512xf32, #tpu.memory_space<vmem>>, vector<1x8x64xf32>,
    %69 = vector.extract_strided_slice %12 {offsets = [7, 0], sizes = [1, 64], strides = [1, 1]} : vector<8x64xf32> to vector<1x64xf32>
    %70 = vector.broadcast %69 : vector<1x64xf32> to vector<8x64xf32>
    %71 = arith.addf %4, %70 : vector<8x64xf32>
    %cst_32 = arith.constant 0.000000e+00 : f32
    %72 = vector.broadcast %cst_32 : f32 to vector<8x64xf32>
    %73 = arith.maximumf %71, %72 : vector<8x64xf32>
    %c0_33 = arith.constant 0 : index
    %c0_34 = arith.constant 0 : index
    %c448 = arith.constant 448 : index
    %74 = vector.load %arg6[%c0_33, %c0_34, %c448] : memref<1x8x512xf32, #tpu.memory_space<vmem>>, vector<1x8x64xf32>
    %75 = vector.shape_cast %74 : vector<1x8x64xf32> to vector<8x64xf32>
    %76 = vector.shape_cast %73 : vector<8x64xf32> to vector<1x8x64xf32>
    tpu.vector_store %arg6[%c0_33, %c0_34, %c448], %76 {strides = array<i32>} : memref<1x8x512xf32, #tpu.memory_space<vmem>>, vector<1x8x64xf32>,
    return
  }
  func.func @transform_0(%arg0: i32, %arg1: i32) -> (i32, i32, i32) {
    %c0_i32 = arith.constant 0 : i32
    %c0_i32_0 = arith.constant 0 : i32
    return %arg0, %arg1, %c0_i32 : i32, i32, i32
  }
  func.func @transform_1(%arg0: i32, %arg1: i32) -> (i32, i32, i32) {
    %c0_i32 = arith.constant 0 : i32
    %c0_i32_0 = arith.constant 0 : i32
    %c0_i32_1 = arith.constant 0 : i32
    return %arg0, %c0_i32, %c0_i32_0 : i32, i32, i32
  }
  func.func @transform_2(%arg0: i32, %arg1: i32) -> (i32, i32) {
    %c0_i32 = arith.constant 0 : i32
    %c0_i32_0 = arith.constant 0 : i32
    %c0_i32_1 = arith.constant 0 : i32
    return %c0_i32, %c0_i32_0 : i32, i32
  }
  func.func @transform_3(%arg0: i32, %arg1: i32) -> (i32, i32) {
    %c0_i32 = arith.constant 0 : i32
    %c0_i32_0 = arith.constant 0 : i32
    %c0_i32_1 = arith.constant 0 : i32
    return %c0_i32, %c0_i32_0 : i32, i32
  }
  func.func @transform_4(%arg0: i32, %arg1: i32) -> (i32, i32, i32) {
    %c0_i32 = arith.constant 0 : i32
    %c0_i32_0 = arith.constant 0 : i32
    return %arg0, %arg1, %c0_i32 : i32, i32, i32
  }
}

</mosaic_0001>

<bundles_post_ra>
// kernel: fully_connected_forward.2
= control target key start
LH: loop header
LB: loop body
LE: loop exit
PB: predicated region body
PF: predicated region fallthrough
CT: control target
= control target key end

     0   :  { %11 = vsyncpa [#allocation3], 0  ;;  %s305_s0 = inlined_call_operand.hbm [shape: f32[16,32], index: 0, kind: input, shape index: {}]   ;;  %s306_s1 = inlined_call_operand.hbm [shape: f32[16,32], index: 1, kind: input, shape index: {}]   ;;  %s307_s2 = inlined_call_operand.hbm [shape: f32[32,64], index: 2, kind: input, shape index: {}]   ;;  %s308_s3 = inlined_call_operand.vmem [shape: f32[1,64], index: 3, kind: input, shape index: {}]   ;;  %s309_s4 = inlined_call_operand.vmem [shape: f32[16,64], index: 4, kind: output, shape index: {0}]   ;;  %s310_s5 = inlined_call_operand.vmem [shape: f32[16,64], index: 5, kind: output, shape index: {1}]  }
   0x1   :  { %12 = vsyncpa [#allocation5], 0  ;;  %s30_s20 = sshll.u32 %s306_s1, 4  ;;  %s246_s21 = smov [#allocation4]   ;;  %s31_s20 = int_to_ptr.hbm [resolvable:$true] %s30_s20 }
   0x2   :  { %s32_s22 = sshll.u32 %s246_s21, 4  ;;  %s17_s25 = sshll.u32 %s305_s0, 4  ;;  %s33_s22 = int_to_ptr.vmem [resolvable:$true] %s32_s22  ;;  %s18_s25 = int_to_ptr.hbm [resolvable:$true] %s17_s25 }
   0x3   :  { %s247_s26 = smov 128   ;;  %s248_s27 = smov 8  }
   0x4   :  { %38 = dma.hbm_to_vmem [thread:$0]  %s31_s20, 256, %s33_s22, [#allocation5], %s247_s26, %s247_s26, %s248_s27  }
   0x5   :  { %s249_s28 = smov [#allocation2]   ;;  %s43_s7 = sshll.u32 %s307_s2, 4  ;;  %s44_s7 = int_to_ptr.hbm [resolvable:$true] %s43_s7 }
   0x6   :  { %s19_s29 = sshll.u32 %s249_s28, 4  ;;  %s250_s1 = smov [#allocation6]   ;;  %s20_s29 = int_to_ptr.vmem [resolvable:$true] %s19_s29 }
   0x7   :  { %25 = dma.hbm_to_vmem [thread:$0]  %s18_s25, 256, %s20_s29, [#allocation3], %s247_s26, %s247_s26, %s248_s27  }
   0x8   :  { %s45_s8 = sshll.u32 %s250_s1, 4  ;;  %s46_s8 = int_to_ptr.vmem [resolvable:$true] %s45_s8 }
   0x9   :  { %51 = dma.hbm_to_vmem [thread:$0]  %s44_s7, 512, %s46_s8, [#allocation5], %s247_s26, %s247_s26, %s248_s27  }
   0xa   :  { %242 = dma.done.wait [#allocation3], 256  }
   0xb   :  { %243 = vsyncadd [#allocation3], 4294967040 }
   0xc   :  { %244 = dma.done.wait [#allocation5], 768  }
   0xd   :  { %245 = vsyncadd [#allocation5], 4294966528  ;;  %v69_v0 = vld [vmem:[#allocation6 + $0x18] sm:$0xff]  ;;  %v68_v1 = vld [vmem:[#allocation6 + $0x10] sm:$0xff]  ;;  %vm72_vm0 = vcmask 261120   ;;  %vm102_vm1 = vcmask 523264  }
   0xe   :  { %160 = vmatpush.msra.mxu3 %v69_v0  ;;  %156 = vmatpush.msra.mxu2 %v69_v0  ;;  %v67_v2 = vld [vmem:[#allocation6 + $0x8] sm:$0xff]  ;;  %v66_v3 = vld [vmem:[#allocation6] sm:$0xff]  ;;  %v106_v4 = vld [vmem:[#allocation4 + $0x8] sm:$0xff] }
   0xf   :  { %129 = vmatpush.msra.mxu1 %v69_v0  ;;  %91 = vmatpush.msra.mxu0 %v69_v0  ;;  %v71_v5 = vld [vmem:[#allocation2 + $0x8] sm:$0xff]  ;;  %v105_v6 = vld [vmem:[#allocation4] sm:$0xff]  ;;  %v70_v7 = vld [vmem:[#allocation2] sm:$0xff] }
  0x10   :  { %161 = vmatpush.msra.mxu3 %v68_v1  ;;  %157 = vmatpush.msra.mxu2 %v68_v1  ;;  %v169_v8 = vld [vmem:[%s308_s3] ss:$0 sm:$0xff] }
  0x11   :  { %130 = vmatpush.msra.mxu1 %v68_v1  ;;  %92 = vmatpush.msra.mxu0 %v68_v1 }
  0x12   :  { %162 = vmatpush.msra.mxu3 %v67_v2  ;;  %158 = vmatpush.msra.mxu2 %v67_v2 }
  0x13   :  { %131 = vmatpush.msra.mxu1 %v67_v2  ;;  %93 = vmatpush.msra.mxu0 %v67_v2 }
  0x14   :  { %163 = vmatpush.msra.mxu3 %v66_v3  ;;  %159 = vmatpush.msra.mxu2 %v66_v3 }
  0x15   :  { %155 = vmatmul.msk.f32.vlgmr.msra.gmra.mxu3 %vm72_vm0, %v106_v4  ;;  %153 = vmatmul.msk.f32.vlgmr.msra.gmra.mxu2 %vm72_vm0, %v71_v5 }
  0x16   :  { %132 = vmatpush.msra.mxu1 %v66_v3  ;;  %94 = vmatpush.msra.mxu0 %v66_v3 }
  0x17   :  { %154 = vmatmul.msk.f32.vlgmr.msra.gmra.mxu1 %vm72_vm0, %v105_v6  ;;  %152 = vmatmul.msk.f32.vlgmr.msra.gmra.mxu0 %vm72_vm0, %v70_v7 }
  0x94   :  { %v134_v9 = vpop.f32.mrf.mxu1  ;;  %v96_v10 = vpop.f32.mrf.mxu0 }
  0x95   :  { %v135_v11 = vadd.f32 %v169_v8, %v134_v9  ;;  %103 = vst.msk [vmem:[%s309_s4] sm:$0xff] %vm102_vm1, %v96_v10 }
  0x97   :  { %140 = vst.msk [vmem:[%s310_s5] sm:$0xff] %vm102_vm1, %v135_v11 }
  0x98   :  { %v137_v12 = vpop.f32.mrf.mxu3  ;;  %v99_v13 = vpop.f32.mrf.mxu2 }
  0x99   :  { %v138_v14 = vadd.f32 %v169_v8, %v137_v12  ;;  %104 = vst.msk [vmem:[%s309_s4 + $0x8] sm:$0xff] %vm102_vm1, %v99_v13 }
  0x9b   :  { %141 = vst.msk [vmem:[%s310_s5 + $0x8] sm:$0xff] %vm102_vm1, %v138_v14 }
  0x9c   :  { %150 = vsyncpa [#allocation3], 1 }
  0x9d   :  { %151 = vsyncpa [#allocation5], 1 }

// kernel: fully_connected_forward.3
= control target key start
LH: loop header
LB: loop body
LE: loop exit
PB: predicated region body
PF: predicated region fallthrough
CT: control target
= control target key end

     0   :  { %s495_s15 = smov 0   ;;  %s497_s16 = smov 0   ;;  %s541_s0 = inlined_call_operand.vmem [shape: f32[2,8,64], index: 0, kind: input, shape index: {}]   ;;  %s542_s1 = inlined_call_operand.vmem [shape: f32[2,8,64], index: 1, kind: input, shape index: {}]   ;;  %s543_s2 = inlined_call_operand.vmem [shape: f32[1,64], index: 2, kind: input, shape index: {}]   ;;  %s544_s3 = inlined_call_operand.vmem [shape: f32[1,64], index: 3, kind: input, shape index: {}]   ;;  %s545_s4 = inlined_call_operand.vmem [shape: f32[2,8,512], index: 4, kind: output, shape index: {}]  }
   0x1   :  { %s499_s17 = smov 0  }
   0x2 LB: > { %s26_s18 = sadd.s32 1, %s463_s16  ;;  %p410_p0 = scmp.ge.s32.totalorder %s467_s17, 1  ;;  %s467_s17 = sphi %s499_s17, %s14_s17   ;;  %s463_s16 = sphi %s497_s16, %s547_s16   ;;  %s459_s15 = sphi %s495_s15, %s546_s15  }
   0x3   : > { %p28_p1 = scmp.ge.s32.totalorder %s26_s18, 2  ;;  %p189_p2 = scmp.lt.s32.totalorder %s467_s17, 3 }
   0x5   : > { %s549_s18 = smov (%p28_p1, %s26_s18), 0  ;;  %p190_p3 = pnand %p410_p0, %p189_p2 }
   0x6   : > { %p225_p4 = scmp.lt.s32.totalorder (!%p190_p3), %s459_s15, 1  ;;  %s469_s30 = smov (!%p190_p3), 64  }
   0x7   : > { %193 = sbr.rel (%p190_p3) target bundleno = 152 (0x98), region = 36 }
   0xc   : > { %s551_s15 = smov (!%p225_p4, %s459_s15), 1  ;;  %v443_v0 = vld [vmem:[%s543_s2] ss:$0 sm:$0xff]  ;;  %vm261_vm0 = vcmask 523264   ;;  %vm270_vm1 = vcmask 1048064  }
   0xd   : > { %s411_s21 = sshll.u32 %s551_s15, 3  ;;  %v444_v1 = vld [vmem:[%s544_s3] ss:$0 sm:$0xff]  ;;  %s417_s5 = sshll.u32 %s551_s15, 5 }
   0xe   : > { %s231_s24 = scalar_lea.vmem %s541_s0, %s411_s21  ;;  %s235_s27 = scalar_lea.vmem %s542_s1, %s411_s21 }
   0xf   : > { %v245_v2 = vld [vmem:[%s231_s24] sm:$0xff]  ;;  %s244_s8 = scalar_lea.vmem %s545_s4, %s417_s5 }
  0x10   : > { %v251_v3 = vld [vmem:[%s235_s27] sm:$0xff]  ;;  %v250_v5 = vmul.f32 %v443_v0, %v245_v2 }
  0x11   : > { %v252_v4 = vmul.f32 %v443_v0, %v251_v3 }
  0x13   : > { %v257_v6 = vadd.f32 %v444_v1, %v252_v4 }
  0x15   : > { %v288_v7 = vperm.slane %v257_v6, 5  ;;  %v263_v8 = vperm.slane %v257_v6, 1  ;;  %v300_v11 = vperm.slane %v257_v6, 7  ;;  %v276_v12 = vperm.slane %v257_v6, 3 }
  0x16   : > { %v284_v19 = vperm.slane %v257_v6, 4  ;;  %v258_v20 = vperm.slane %v257_v6, 0  ;;  %v296_v25 = vperm.slane %v257_v6, 6  ;;  %v272_v26 = vperm.slane %v257_v6, 2 }
  0x17   : > { %v289_v9 = vadd.f32 %v288_v7, %v250_v5  ;;  %v264_v10 = vadd.f32 %v263_v8, %v250_v5  ;;  %v301_v15 = vadd.f32 %v300_v11, %v250_v5  ;;  %v277_v16 = vadd.f32 %v276_v12, %v250_v5 }
  0x18   : > { %v285_v21 = vadd.f32 %v284_v19, %v250_v5  ;;  %v259_v22 = vadd.f32 %v258_v20, %v250_v5  ;;  %v297_v27 = vadd.f32 %v296_v25, %v250_v5  ;;  %v273_v28 = vadd.f32 %v272_v26, %v250_v5 }
  0x19   : > { %v290_v13 = vmax.f32 %v289_v9, 0.0  ;;  %v265_v14 = vmax.f32 %v264_v10, 0.0  ;;  %v302_v17 = vmax.f32 %v301_v15, 0.0  ;;  %v278_v18 = vmax.f32 %v277_v16, 0.0 }
  0x1a   : > { %v286_v23 = vmax.f32 %v285_v21, 0.0  ;;  %v260_v24 = vmax.f32 %v259_v22, 0.0  ;;  %v298_v29 = vmax.f32 %v297_v27, 0.0  ;;  %v274_v30 = vmax.f32 %v273_v28, 0.0 }
  0x1b   : > { %292 = vrot.lane.b32.xlu1 %v290_v13, %s469_s30  ;;  %267 = vrot.lane.b32.xlu0 %v265_v14, %s469_s30 }
  0x1c   : > { %287 = vst.msk [vmem:[%s244_s8 + $0x10] sm:$0xff] %vm261_vm0, %v286_v23 }
  0x1d   : > { %262 = vst.msk [vmem:[%s244_s8] sm:$0xff] %vm261_vm0, %v260_v24 }
  0x1e   : > { %299 = vst.msk [vmem:[%s244_s8 + $0x18] sm:$0xff] %vm261_vm0, %v298_v29 }
  0x1f   : > { %275 = vst.msk [vmem:[%s244_s8 + $0x8] sm:$0xff] %vm261_vm0, %v274_v30 }
  0x23   : > { %304 = vrot.lane.b32.xlu1 %v302_v17, %s469_s30  ;;  %280 = vrot.lane.b32.xlu0 %v278_v18, %s469_s30 }
  0x8d   : > { %v293_v31 = vpop.permute.xlu1 %292  ;;  %v268_v32 = vpop.permute.xlu0 %267 }
  0x8e   : > { %295 = vst.msk [vmem:[%s244_s8 + $0x10] sm:$0xff] %vm270_vm1, %v293_v31 }
  0x8f   : > { %271 = vst.msk [vmem:[%s244_s8] sm:$0xff] %vm270_vm1, %v268_v32 }
  0x95   : > { %v305_v33 = vpop.permute.xlu1 %304  ;;  %v281_v34 = vpop.permute.xlu0 %280 }
  0x96   : > { %307 = vst.msk [vmem:[%s244_s8 + $0x18] sm:$0xff] %vm270_vm1, %v305_v33 }
  0x97   : > { %283 = vst.msk [vmem:[%s244_s8 + $0x8] sm:$0xff] %vm270_vm1, %v281_v34 }
  0x98 PF: > { %s14_s17 = sadd.s32 1, %s467_s17   ;;  %s546_s15 = smov %s463_s16 }
  0x99   : > { %p11_p5 = scmp.ge.s32.totalorder %s14_s17, 4   ;;  %s547_s16 = smov %s549_s18 }
  0x9b   :  { %13 = sbr.rel (!%p11_p5) target bundleno = 2 (0x2), region = 69 }

</bundles_post_ra>
